<compile_context>
chip_gen: v6e
topology: v6e:2x2x1
jax: 0.10.0
libtpu: 0.0.40
codegen_flags: <defaults>
</compile_context>

<pallas_src>
import jax
import jax.numpy as jnp
from jax.experimental import pallas as pl
from jax.experimental.pallas import tpu as pltpu

EPS = 1e-5
LANE = 128


def _rup(n, m=LANE):
    return ((n + m - 1) // m) * m


def _make_kernel(groups_per_tile, batch):
    """Kernel closure specialized on static (groups_per_tile, batch)."""

    def kernel(x_ref, w1_ref, w2_ref, wh_ref, vec_ref, out_ref):
        h1 = w1_ref.shape[1]          # padded hidden-1 width (static)
        h2 = w2_ref.shape[1]          # padded hidden-2 width (static)
        op = wh_ref.shape[1]          # padded fused-head width (static)
        gpt, b = groups_per_tile, batch

        def bn(y, gamma, beta):
            # Training-mode BatchNorm1d per group, centered (two-pass) variance.
            yg = y.reshape(gpt, b, y.shape[-1])
            mean = jnp.mean(yg, axis=1, keepdims=True)
            c = yg - mean
            var = jnp.mean(c * c, axis=1, keepdims=True)
            out = c * jax.lax.rsqrt(var + EPS) * gamma + beta
            return out.reshape(gpt * b, y.shape[-1])

        x = x_ref[...]                # (gpt*b, din_pad) f32

        # Hidden layer 1: Linear -> ReLU -> BatchNorm (per group)
        h = jnp.dot(x.astype(w1_ref.dtype), w1_ref[...],
                    preferred_element_type=jnp.float32) + vec_ref[0:1, :h1]
        h = jnp.maximum(h, 0.0)
        h = bn(h, vec_ref[1:2, :h1], vec_ref[2:3, :h1])

        # Hidden layer 2: Linear -> ReLU -> BatchNorm (per group)
        h = jnp.dot(h.astype(w2_ref.dtype), w2_ref[...],
                    preferred_element_type=jnp.float32) + vec_ref[3:4, :h2]
        h = jnp.maximum(h, 0.0)
        h = bn(h, vec_ref[4:5, :h2], vec_ref[5:6, :h2])

        # Fused heads: [mu slab | log_var slab], each 128-lane aligned.
        out_ref[...] = (
            jnp.dot(h.astype(wh_ref.dtype), wh_ref[...],
                    preferred_element_type=jnp.float32)
            + vec_ref[6:7, :op]
        )

    return kernel


def prepare_params(params, matmul_dtype=jnp.float32):
    """Transpose, fuse, zero-pad and (optionally) downcast parameters once."""
    f32 = lambda a: jnp.asarray(a, jnp.float32)

    w1 = f32(params["w1"]).T                      # (din, h1)
    w2 = f32(params["w2"]).T                      # (h1,  h2)
    w_mu = f32(params["w_mu"]).T                  # (h2, latent)
    w_var = f32(params["w_var"]).T                # (h2, latent)

    din, h1 = w1.shape
    h2 = w2.shape[1]
    latent = w_mu.shape[1]
    din_p, h1p, h2p, lat_p = _rup(din), _rup(h1), _rup(h2), _rup(latent)
    out_p = 2 * lat_p

    def pad2(a, r, c):
        return jnp.pad(a, ((0, r - a.shape[0]), (0, c - a.shape[1])))

    w1p = pad2(w1, din_p, h1p).astype(matmul_dtype)          # (din_p, h1p)
    w2p = pad2(w2, h1p, h2p).astype(matmul_dtype)            # (h1p,  h2p)
    whp = jnp.concatenate(                                   # (h2p, 2*lat_p)
        [pad2(w_mu, h2p, lat_p), pad2(w_var, h2p, lat_p)], axis=1
    ).astype(matmul_dtype)

    wmax = max(h1p, h2p, out_p)

    def row(v):
        fv = f32(v)
        return jnp.pad(fv, (0, wmax - fv.shape[0]))

    b_head = jnp.concatenate([
        jnp.pad(f32(params["b_mu"]), (0, lat_p - latent)),
        jnp.pad(f32(params["b_var"]), (0, lat_p - latent)),
    ])
    vec = jnp.stack([
        row(params["b1"]), row(params["gamma1"]), row(params["beta1"]),
        row(params["b2"]), row(params["gamma2"]), row(params["beta2"]),
        row(b_head), jnp.zeros((wmax,), jnp.float32),
    ])                                                       # (8, wmax) packed

    meta = dict(din=din, din_pad=din_p, latent=latent, latent_pad=lat_p)
    return (w1p, w2p, whp, vec), meta


def make_ecg_group_encoder(params, *, group_tiles=1, matmul_dtype=jnp.float32):
    """Build a jitted forward fn closing over pre-padded / fused parameters.

    group_tiles=2 gives a 2-step 'parallel' grid (v7x megacore); group_tiles=1
    (default) folds everything into one step (best on v5e/v6e).  matmul_dtype
    may be jnp.bfloat16 for MXU speed on v6e/v7x (f32 accumulation kept).
    """
    (w1p, w2p, whp, vec), meta = prepare_params(params, matmul_dtype)
    din, din_pad = meta["din"], meta["din_pad"]
    latent, latent_pad = meta["latent"], meta["latent_pad"]
    out_pad = whp.shape[1]
    h1p, h2p = w1p.shape[1], w2p.shape[1]

    def _nbytes(a):
        return int(a.size) * a.dtype.itemsize

    def forward(x):
        squeeze = x.ndim == 2
        if squeeze:
            x = x[None]                           # (1, B, D)
        x = x.astype(jnp.float32)
        g, b, d = x.shape
        assert d == din, f"expected feature dim {din}, got {d}"

        # Pick tiling: tiles>1 only if groups divide evenly AND the per-tile
        # row block keeps the (8,128) sublane constraint.
        tiles = group_tiles
        if tiles < 1 or g % tiles != 0 or ((g // tiles) * b) % 8 != 0:
            tiles = 1
        gpt = g // tiles
        rows_per_tile = gpt * b

        # Lane-pad features and flatten (groups, batch) into one big MXU M dim.
        xp = jnp.pad(x, ((0, 0), (0, 0), (0, din_pad - d)))
        xp = xp.reshape(g * b, din_pad)

        kernel = _make_kernel(gpt, b)

        def full_spec(a):
            # Constant block index across the grid -> fetched once, resident.
            return pl.BlockSpec(a.shape, lambda i: (0,) * a.ndim)

        flops = 2 * g * b * (din_pad * h1p + h1p * h2p + h2p * out_pad)
        bytes_accessed = (_nbytes(xp) + _nbytes(w1p) + _nbytes(w2p)
                          + _nbytes(whp) + _nbytes(vec)
                          + g * b * out_pad * 4)
        transcendentals = 2 * g * (h1p + h2p)     # rsqrt per BN feature/group

        grid_spec = pltpu.PrefetchScalarGridSpec(
            num_scalar_prefetch=0,
            grid=(tiles,),
            in_specs=[
                pl.BlockSpec((rows_per_tile, din_pad), lambda i: (i, 0)),
                full_spec(w1p), full_spec(w2p), full_spec(whp), full_spec(vec),
            ],
            out_specs=pl.BlockSpec((rows_per_tile, out_pad), lambda i: (i, 0)),
        )
        out = pl.pallas_call(
            kernel,
            out_shape=jax.ShapeDtypeStruct((g * b, out_pad), jnp.float32),
            grid_spec=grid_spec,
            compiler_params=pltpu.CompilerParams(
                dimension_semantics=("parallel",)),   # megacore when tiles>1
            cost_estimate=pl.CostEstimate(
                flops=flops, transcendentals=transcendentals,
                bytes_accessed=bytes_accessed),
        )(xp, w1p, w2p, whp, vec)

        out = out.reshape(g, b, out_pad)
        mu = out[..., :latent]                               # lane offset 0
        log_var = out[..., latent_pad:latent_pad + latent]   # lane offset 128k
        if squeeze:
            mu, log_var = mu[0], log_var[0]
        return mu, log_var

    return jax.jit(forward)


def init_params(key, input_dim, hidden_dims, latent_dim):
    """Deterministic synthetic parameter init (shapes follow the PyTorch module)."""
    assert len(hidden_dims) == 2, "kernel is specialized to 2 hidden layers"
    ks = jax.random.split(key, 8)
    h1, h2 = hidden_dims

    def lin(kw, kb, out_d, in_d):
        bound = 1.0 / jnp.sqrt(in_d)
        w = jax.random.uniform(kw, (out_d, in_d), jnp.float32, -bound, bound)
        b = jax.random.uniform(kb, (out_d,), jnp.float32, -bound, bound)
        return w, b

    w1, b1 = lin(ks[0], ks[1], h1, input_dim)
    w2, b2 = lin(ks[2], ks[3], h2, h1)
    w_mu, b_mu = lin(ks[4], ks[5], latent_dim, h2)
    w_var, b_var = lin(ks[6], ks[7], latent_dim, h2)

    return dict(
        w1=w1, b1=b1, gamma1=jnp.ones((h1,), jnp.float32), beta1=jnp.zeros((h1,), jnp.float32),
        w2=w2, b2=b2, gamma2=jnp.ones((h2,), jnp.float32), beta2=jnp.zeros((h2,), jnp.float32),
        w_mu=w_mu, b_mu=b_mu, w_var=w_var, b_var=b_var,
    )


def reference_forward(x, params):
    """Pure-JAX reference mirroring the PyTorch forward (training-mode BN)."""
    h = x.astype(jnp.float32)
    for wk, bk, gk, bek in (("w1", "b1", "gamma1", "beta1"), ("w2", "b2", "gamma2", "beta2")):
        h = h @ params[wk].T + params[bk]
        h = jnp.maximum(h, 0.0)
        mean = jnp.mean(h, axis=0, keepdims=True)
        var = jnp.mean((h - mean) ** 2, axis=0, keepdims=True)
        h = (h - mean) / jnp.sqrt(var + EPS) * params[gk] + params[bek]
    mu = h @ params["w_mu"].T + params["b_mu"]
    log_var = h @ params["w_var"].T + params["b_var"]
    return mu, log_var


if __name__ == "__main__":
    input_dim, hidden_dims, latent_dim = 16, [32, 32], 8
    groups, batch = 4, 8

    key = jax.random.PRNGKey(0)
    kx, kp = jax.random.split(key)
    params = init_params(kp, input_dim, hidden_dims, latent_dim)

    x = jax.random.normal(kx, (groups, batch, input_dim), jnp.float32)
    mu_ref, lv_ref = jax.vmap(lambda xg: reference_forward(xg, params))(x)

    # Default: all groups fused into one kernel step (one big MXU matmul).
    forward = make_ecg_group_encoder(params)
    mu, log_var = forward(x)
    jax.block_until_ready((mu, log_var))
    assert jnp.allclose(mu, mu_ref, atol=1e-4, rtol=1e-4)
    assert jnp.allclose(log_var, lv_ref, atol=1e-4, rtol=1e-4)

    # Two group tiles: megacore-friendly path on v7x (still correct everywhere).
    forward2 = make_ecg_group_encoder(params, group_tiles=2)
    mu2, lv2 = forward2(x)
    jax.block_until_ready((mu2, lv2))
    assert jnp.allclose(mu2, mu_ref, atol=1e-4, rtol=1e-4)
    assert jnp.allclose(lv2, lv_ref, atol=1e-4, rtol=1e-4)

    # Single (B, D) call, matching the PyTorch module's calling convention.
    mu1, lv1 = forward(x[0])
    jax.block_until_ready((mu1, lv1))
    mu1_ref, lv1_ref = reference_forward(x[0], params)
    assert jnp.allclose(mu1, mu1_ref, atol=1e-4, rtol=1e-4)
    assert jnp.allclose(lv1, lv1_ref, atol=1e-4, rtol=1e-4)

    print("KERNEL_OK")
</pallas_src>

<mosaic_0001>
module attributes {stable_mosaic.version = 11 : i64} {
  func.func @kernel(%arg0: i32, %arg1: memref<32x128xf32, #tpu.memory_space<vmem>>, %arg2: memref<128x128xf32, #tpu.memory_space<vmem>>, %arg3: memref<128x128xf32, #tpu.memory_space<vmem>>, %arg4: memref<128x256xf32, #tpu.memory_space<vmem>>, %arg5: memref<8x256xf32, #tpu.memory_space<vmem>>, %arg6: memref<32x256xf32, #tpu.memory_space<vmem>>) attributes {dimension_semantics = [#tpu.dimension_semantics<parallel>], iteration_bounds = array<i64: 1>, scalar_prefetch = 0 : i64, scratch_operands = 0 : i64, tpu.core_type = #tpu.core_type<tc>, window_params = [{transform_indices = @transform_0, window_bounds = array<i64: 32, 128>}, {pipeline_mode = #tpu.pipeline_mode<synchronous>, transform_indices = @transform_1, window_bounds = array<i64: 128, 128>}, {pipeline_mode = #tpu.pipeline_mode<synchronous>, transform_indices = @transform_2, window_bounds = array<i64: 128, 128>}, {pipeline_mode = #tpu.pipeline_mode<synchronous>, transform_indices = @transform_3, window_bounds = array<i64: 128, 256>}, {pipeline_mode = #tpu.pipeline_mode<synchronous>, transform_indices = @transform_4, window_bounds = array<i64: 8, 256>}, {transform_indices = @transform_5, window_bounds = array<i64: 32, 256>}]} {
    %c0 = arith.constant 0 : index
    %c0_0 = arith.constant 0 : index
    %0 = vector.load %arg1[%c0, %c0_0] : memref<32x128xf32, #tpu.memory_space<vmem>>, vector<32x128xf32>
    %c0_1 = arith.constant 0 : index
    %c0_2 = arith.constant 0 : index
    %1 = vector.load %arg2[%c0_1, %c0_2] : memref<128x128xf32, #tpu.memory_space<vmem>>, vector<128x128xf32>
    %cst = arith.constant dense<0.000000e+00> : vector<32x128xf32>
    %2 = tpu.matmul %0, %1, %cst {dimension_numbers = #tpu.dot_dimension_numbers<[1], [0], [0], [1], [0, 0, 1, 1], [], []>} : vector<32x128xf32>, vector<128x128xf32>, vector<32x128xf32> -> vector<32x128xf32>
    %c0_3 = arith.constant 0 : index
    %c0_4 = arith.constant 0 : index
    %3 = vector.load %arg5[%c0_3, %c0_4] : memref<8x256xf32, #tpu.memory_space<vmem>>, vector<1x128xf32>
    %4 = vector.broadcast %3 : vector<1x128xf32> to vector<32x128xf32>
    %5 = arith.addf %2, %4 : vector<32x128xf32>
    %cst_5 = arith.constant 0.000000e+00 : f32
    %6 = vector.broadcast %cst_5 : f32 to vector<32x128xf32>
    %7 = arith.maximumf %5, %6 : vector<32x128xf32>
    %c1 = arith.constant 1 : index
    %c0_6 = arith.constant 0 : index
    %8 = vector.load %arg5[%c1, %c0_6] : memref<8x256xf32, #tpu.memory_space<vmem>>, vector<1x128xf32>
    %c2 = arith.constant 2 : index
    %c0_7 = arith.constant 0 : index
    %9 = vector.load %arg5[%c2, %c0_7] : memref<8x256xf32, #tpu.memory_space<vmem>>, vector<1x128xf32>
    %10 = vector.shape_cast %7 : vector<32x128xf32> to vector<4x8x128xf32>
    %cst_8 = arith.constant dense<0.000000e+00> : vector<4x128xf32>
    %11 = vector.multi_reduction <add>, %10, %cst_8 [1] : vector<4x8x128xf32> to vector<4x128xf32>
    %12 = vector.shape_cast %11 : vector<4x128xf32> to vector<4x1x128xf32>
    %cst_9 = arith.constant 8.000000e+00 : f32
    %13 = vector.broadcast %cst_9 : f32 to vector<4x1x128xf32>
    %14 = arith.divf %12, %13 : vector<4x1x128xf32>
    %15 = vector.broadcast %14 : vector<4x1x128xf32> to vector<4x8x128xf32>
    %16 = arith.subf %10, %15 : vector<4x8x128xf32>
    %17 = arith.mulf %16, %16 : vector<4x8x128xf32>
    %cst_10 = arith.constant dense<0.000000e+00> : vector<4x128xf32>
    %18 = vector.multi_reduction <add>, %17, %cst_10 [1] : vector<4x8x128xf32> to vector<4x128xf32>
    %19 = vector.shape_cast %18 : vector<4x128xf32> to vector<4x1x128xf32>
    %cst_11 = arith.constant 8.000000e+00 : f32
    %20 = vector.broadcast %cst_11 : f32 to vector<4x1x128xf32>
    %21 = arith.divf %19, %20 : vector<4x1x128xf32>
    %cst_12 = arith.constant 9.99999974E-6 : f32
    %22 = vector.broadcast %cst_12 : f32 to vector<4x1x128xf32>
    %23 = arith.addf %21, %22 : vector<4x1x128xf32>
    %24 = math.rsqrt %23 : vector<4x1x128xf32>
    %25 = vector.broadcast %24 : vector<4x1x128xf32> to vector<4x8x128xf32>
    %26 = arith.mulf %16, %25 : vector<4x8x128xf32>
    %27 = vector.shape_cast %8 : vector<1x128xf32> to vector<1x1x128xf32>
    %28 = vector.broadcast %27 : vector<1x1x128xf32> to vector<4x8x128xf32>
    %29 = arith.mulf %26, %28 : vector<4x8x128xf32>
    %30 = vector.shape_cast %9 : vector<1x128xf32> to vector<1x1x128xf32>
    %31 = vector.broadcast %30 : vector<1x1x128xf32> to vector<4x8x128xf32>
    %32 = arith.addf %29, %31 : vector<4x8x128xf32>
    %33 = vector.shape_cast %32 : vector<4x8x128xf32> to vector<32x128xf32>
    %c0_13 = arith.constant 0 : index
    %c0_14 = arith.constant 0 : index
    %34 = vector.load %arg3[%c0_13, %c0_14] : memref<128x128xf32, #tpu.memory_space<vmem>>, vector<128x128xf32>
    %cst_15 = arith.constant dense<0.000000e+00> : vector<32x128xf32>
    %35 = tpu.matmul %33, %34, %cst_15 {dimension_numbers = #tpu.dot_dimension_numbers<[1], [0], [0], [1], [0, 0, 1, 1], [], []>} : vector<32x128xf32>, vector<128x128xf32>, vector<32x128xf32> -> vector<32x128xf32>
    %c3 = arith.constant 3 : index
    %c0_16 = arith.constant 0 : index
    %36 = vector.load %arg5[%c3, %c0_16] : memref<8x256xf32, #tpu.memory_space<vmem>>, vector<1x128xf32>
    %37 = vector.broadcast %36 : vector<1x128xf32> to vector<32x128xf32>
    %38 = arith.addf %35, %37 : vector<32x128xf32>
    %cst_17 = arith.constant 0.000000e+00 : f32
    %39 = vector.broadcast %cst_17 : f32 to vector<32x128xf32>
    %40 = arith.maximumf %38, %39 : vector<32x128xf32>
    %c4 = arith.constant 4 : index
    %c0_18 = arith.constant 0 : index
    %41 = vector.load %arg5[%c4, %c0_18] : memref<8x256xf32, #tpu.memory_space<vmem>>, vector<1x128xf32>
    %c5 = arith.constant 5 : index
    %c0_19 = arith.constant 0 : index
    %42 = vector.load %arg5[%c5, %c0_19] : memref<8x256xf32, #tpu.memory_space<vmem>>, vector<1x128xf32>
    %43 = vector.shape_cast %40 : vector<32x128xf32> to vector<4x8x128xf32>
    %cst_20 = arith.constant dense<0.000000e+00> : vector<4x128xf32>
    %44 = vector.multi_reduction <add>, %43, %cst_20 [1] : vector<4x8x128xf32> to vector<4x128xf32>
    %45 = vector.shape_cast %44 : vector<4x128xf32> to vector<4x1x128xf32>
    %cst_21 = arith.constant 8.000000e+00 : f32
    %46 = vector.broadcast %cst_21 : f32 to vector<4x1x128xf32>
    %47 = arith.divf %45, %46 : vector<4x1x128xf32>
    %48 = vector.broadcast %47 : vector<4x1x128xf32> to vector<4x8x128xf32>
    %49 = arith.subf %43, %48 : vector<4x8x128xf32>
    %50 = arith.mulf %49, %49 : vector<4x8x128xf32>
    %cst_22 = arith.constant dense<0.000000e+00> : vector<4x128xf32>
    %51 = vector.multi_reduction <add>, %50, %cst_22 [1] : vector<4x8x128xf32> to vector<4x128xf32>
    %52 = vector.shape_cast %51 : vector<4x128xf32> to vector<4x1x128xf32>
    %cst_23 = arith.constant 8.000000e+00 : f32
    %53 = vector.broadcast %cst_23 : f32 to vector<4x1x128xf32>
    %54 = arith.divf %52, %53 : vector<4x1x128xf32>
    %cst_24 = arith.constant 9.99999974E-6 : f32
    %55 = vector.broadcast %cst_24 : f32 to vector<4x1x128xf32>
    %56 = arith.addf %54, %55 : vector<4x1x128xf32>
    %57 = math.rsqrt %56 : vector<4x1x128xf32>
    %58 = vector.broadcast %57 : vector<4x1x128xf32> to vector<4x8x128xf32>
    %59 = arith.mulf %49, %58 : vector<4x8x128xf32>
    %60 = vector.shape_cast %41 : vector<1x128xf32> to vector<1x1x128xf32>
    %61 = vector.broadcast %60 : vector<1x1x128xf32> to vector<4x8x128xf32>
    %62 = arith.mulf %59, %61 : vector<4x8x128xf32>
    %63 = vector.shape_cast %42 : vector<1x128xf32> to vector<1x1x128xf32>
    %64 = vector.broadcast %63 : vector<1x1x128xf32> to vector<4x8x128xf32>
    %65 = arith.addf %62, %64 : vector<4x8x128xf32>
    %66 = vector.shape_cast %65 : vector<4x8x128xf32> to vector<32x128xf32>
    %c0_25 = arith.constant 0 : index
    %c0_26 = arith.constant 0 : index
    %67 = vector.load %arg4[%c0_25, %c0_26] : memref<128x256xf32, #tpu.memory_space<vmem>>, vector<128x256xf32>
    %cst_27 = arith.constant dense<0.000000e+00> : vector<32x256xf32>
    %68 = tpu.matmul %66, %67, %cst_27 {dimension_numbers = #tpu.dot_dimension_numbers<[1], [0], [0], [1], [0, 0, 1, 1], [], []>} : vector<32x128xf32>, vector<128x256xf32>, vector<32x256xf32> -> vector<32x256xf32>
    %c6 = arith.constant 6 : index
    %c0_28 = arith.constant 0 : index
    %69 = vector.load %arg5[%c6, %c0_28] : memref<8x256xf32, #tpu.memory_space<vmem>>, vector<1x256xf32>
    %70 = vector.broadcast %69 : vector<1x256xf32> to vector<32x256xf32>
    %71 = arith.addf %68, %70 : vector<32x256xf32>
    %c0_29 = arith.constant 0 : index
    %c0_30 = arith.constant 0 : index
    %72 = vector.load %arg6[%c0_29, %c0_30] : memref<32x256xf32, #tpu.memory_space<vmem>>, vector<32x256xf32>
    tpu.vector_store %arg6[%c0_29, %c0_30], %71 {strides = array<i32>} : memref<32x256xf32, #tpu.memory_space<vmem>>, vector<32x256xf32>,
    return
  }
  func.func @transform_0(%arg0: i32) -> (i32, i32) {
    %c0_i32 = arith.constant 0 : i32
    %c0_i32_0 = arith.constant 0 : i32
    return %arg0, %c0_i32 : i32, i32
  }
  func.func @transform_1(%arg0: i32) -> (i32, i32) {
    %c0_i32 = arith.constant 0 : i32
    %c0_i32_0 = arith.constant 0 : i32
    %c0_i32_1 = arith.constant 0 : i32
    return %c0_i32, %c0_i32_0 : i32, i32
  }
  func.func @transform_2(%arg0: i32) -> (i32, i32) {
    %c0_i32 = arith.constant 0 : i32
    %c0_i32_0 = arith.constant 0 : i32
    %c0_i32_1 = arith.constant 0 : i32
    return %c0_i32, %c0_i32_0 : i32, i32
  }
  func.func @transform_3(%arg0: i32) -> (i32, i32) {
    %c0_i32 = arith.constant 0 : i32
    %c0_i32_0 = arith.constant 0 : i32
    %c0_i32_1 = arith.constant 0 : i32
    return %c0_i32, %c0_i32_0 : i32, i32
  }
  func.func @transform_4(%arg0: i32) -> (i32, i32) {
    %c0_i32 = arith.constant 0 : i32
    %c0_i32_0 = arith.constant 0 : i32
    %c0_i32_1 = arith.constant 0 : i32
    return %c0_i32, %c0_i32_0 : i32, i32
  }
  func.func @transform_5(%arg0: i32) -> (i32, i32) {
    %c0_i32 = arith.constant 0 : i32
    %c0_i32_0 = arith.constant 0 : i32
    return %arg0, %c0_i32 : i32, i32
  }
}

</mosaic_0001>

<bundles_post_ra>
// kernel: forward.1
= control target key start
LH: loop header
LB: loop body
LE: loop exit
PB: predicated region body
PF: predicated region fallthrough
CT: control target
= control target key end

     0   :  { %10 = vsyncpa [#allocation3], 0  ;;  %s911_s0 = inlined_call_operand.vmem [shape: f32[32,128], index: 0, kind: input, shape index: {}]   ;;  %s912_s1 = inlined_call_operand.hbm [shape: f32[128,128], index: 1, kind: input, shape index: {}]   ;;  %s913_s2 = inlined_call_operand.hbm [shape: f32[128,128], index: 2, kind: input, shape index: {}]   ;;  %s914_s3 = inlined_call_operand.hbm [shape: f32[128,256], index: 3, kind: input, shape index: {}]   ;;  %s915_s4 = inlined_call_operand.vmem [shape: f32[8,256], index: 4, kind: input, shape index: {}]   ;;  %s916_s5 = inlined_call_operand.vmem [shape: f32[32,256], index: 5, kind: output, shape index: {}]  }
   0x1   :  { %11 = vsyncpa [#allocation5], 0  ;;  %s803_s18 = smov [#allocation4]   ;;  %s804_s20 = smov [#allocation2]  }
   0x2   :  { %s31_s19 = sshll.u32 %s803_s18, 4  ;;  %s19_s21 = sshll.u32 %s804_s20, 4  ;;  %s32_s19 = int_to_ptr.vmem [resolvable:$true] %s31_s19  ;;  %s20_s21 = int_to_ptr.vmem [resolvable:$true] %s19_s21 }
   0x3   :  { %s747_s22 = scalar_lea.vmem %s32_s19, 2048  ;;  %p752_p1 = scmp.lt.s32.totalorder %s32_s19, %s32_s19 }
   0x4   :  { %p748_p0 = scmp.ne.s32.totalorder %s32_s19, %s747_s22  ;;  %p753_p2 = scmp.lt.s32.totalorder %s747_s22, %s747_s22 }
   0x6   :  { %p754_p3 = por %p753_p2, %p752_p1 }
   0x8   :  { %p755_p4 = pnand %p754_p3, %p748_p0 }
   0xa   :  { %758 = shalt.err (!%p755_p4)
}
   0xb   :  { %s805_s23 = smov 128   ;;  %s806_s24 = smov 8  }
   0xc   :  { %37 = dma.hbm_to_vmem [thread:$0]  %s913_s2, 2048, %s32_s19, [#allocation5], %s805_s23, %s805_s23, %s806_s24  }
   0xd   :  { %s767_s27 = scalar_lea.vmem %s20_s21, 2048  ;;  %p772_p6 = scmp.lt.s32.totalorder %s20_s21, %s20_s21 }
   0xe   :  { %p768_p5 = scmp.ne.s32.totalorder %s20_s21, %s767_s27  ;;  %p773_p7 = scmp.lt.s32.totalorder %s767_s27, %s767_s27 }
  0x10   :  { %p774_p8 = por %p773_p7, %p772_p6 }
  0x12   :  { %p775_p9 = pnand %p774_p8, %p768_p5 }
  0x14   :  { %778 = shalt.err (!%p775_p9)
}
  0x15   :  { %25 = dma.hbm_to_vmem [thread:$0]  %s912_s1, 2048, %s20_s21, [#allocation3], %s805_s23, %s805_s23, %s806_s24  }
  0x16   :  { %s807_s30 = smov [#allocation6]  }
  0x17   :  { %s43_s6 = sshll.u32 %s807_s30, 4  ;;  %s44_s6 = int_to_ptr.vmem [resolvable:$true] %s43_s6 }
  0x18   :  { %s787_s7 = scalar_lea.vmem %s44_s6, 4096  ;;  %p792_p11 = scmp.lt.s32.totalorder %s44_s6, %s44_s6 }
  0x19   :  { %p788_p10 = scmp.ne.s32.totalorder %s44_s6, %s787_s7  ;;  %p793_p12 = scmp.lt.s32.totalorder %s787_s7, %s787_s7 }
  0x1b   :  { %p794_p13 = por %p793_p12, %p792_p11 }
  0x1d   :  { %p795_p0 = pnand %p794_p13, %p788_p10 }
  0x1f   :  { %798 = shalt.err (!%p795_p0)
}
  0x20   :  { %s808_s2 = smov 256   ;;  %s809_s8 = smov 16  }
  0x21   :  { %49 = dma.hbm_to_vmem [thread:$0]  %s914_s3, 4096, %s44_s6, [#allocation5], %s808_s2, %s808_s2, %s809_s8  }
  0x22   :  { %799 = dma.done.wait [#allocation3], 2048  }
  0x23   :  { %800 = vsyncadd [#allocation3], 4294965248 }
  0x24   :  { %801 = dma.done.wait [#allocation5], 6144  }
  0x25   :  { %802 = vsyncadd [#allocation5], 4294961152  ;;  %v80_v0 = vld [vmem:[#allocation2 + $0x78] sm:$0xff]  ;;  %v79_v1 = vld [vmem:[#allocation2 + $0x70] sm:$0xff] }
  0x26   :  { %639 = vmatprep.subr.mxu1 %v80_v0  ;;  %v78_v2 = vld [vmem:[#allocation2 + $0x68] sm:$0xff]  ;;  %v77_v3 = vld [vmem:[#allocation2 + $0x60] sm:$0xff]  ;;  %v76_v5 = vld [vmem:[#allocation2 + $0x58] sm:$0xff] }
  0x27   :  { %640 = vmatpush3.msra.mxu1 %v80_v0  ;;  %v61_v4 = vld [vmem:[%s911_s0] sm:$0xff]  ;;  %v75_v6 = vld [vmem:[#allocation2 + $0x50] sm:$0xff]  ;;  %v74_v7 = vld [vmem:[#allocation2 + $0x48] sm:$0xff] }
  0x28   :  { %641 = vmatprep.subr.mxu1 %v79_v1  ;;  %671 = vmatprep.mubr.f32.mxu1 %v61_v4  ;;  %v73_v8 = vld [vmem:[#allocation2 + $0x40] sm:$0xff]  ;;  %v72_v9 = vld [vmem:[#allocation2 + $0x38] sm:$0xff]  ;;  %v71_v10 = vld [vmem:[#allocation2 + $0x30] sm:$0xff] }
  0x29   :  { %642 = vmatpush3.msra.mxu1 %v79_v1  ;;  %v70_v11 = vld [vmem:[#allocation2 + $0x28] sm:$0xff]  ;;  %v69_v12 = vld [vmem:[#allocation2 + $0x20] sm:$0xff]  ;;  %v68_v13 = vld [vmem:[#allocation2 + $0x18] sm:$0xff] }
  0x2a   :  { %643 = vmatprep.subr.mxu1 %v78_v2  ;;  %v67_v14 = vld [vmem:[#allocation2 + $0x10] sm:$0xff]  ;;  %v66_v15 = vld [vmem:[#allocation2 + $0x8] sm:$0xff]  ;;  %v65_v16 = vld [vmem:[#allocation2] sm:$0xff] }
  0x2b   :  { %644 = vmatpush3.msra.mxu1 %v78_v2  ;;  %v62_v17 = vld [vmem:[%s911_s0 + $0x8] sm:$0xff]  ;;  %v63_v18 = vld [vmem:[%s911_s0 + $0x10] sm:$0xff]  ;;  %v64_v19 = vld [vmem:[%s911_s0 + $0x18] sm:$0xff] }
  0x2c   :  { %645 = vmatprep.subr.mxu1 %v77_v3  ;;  %v273_v20 = vld [vmem:[#allocation4 + $0x78] sm:$0xff]  ;;  %v272_v21 = vld [vmem:[#allocation4 + $0x70] sm:$0xff]  ;;  %v271_v22 = vld [vmem:[#allocation4 + $0x68] sm:$0xff] }
  0x2d   :  { %646 = vmatpush3.msra.mxu1 %v77_v3  ;;  %v270_v23 = vld [vmem:[#allocation4 + $0x60] sm:$0xff]  ;;  %v269_v24 = vld [vmem:[#allocation4 + $0x58] sm:$0xff]  ;;  %v268_v25 = vld [vmem:[#allocation4 + $0x50] sm:$0xff] }
  0x2e   :  { %647 = vmatprep.subr.mxu1 %v76_v5  ;;  %v267_v26 = vld [vmem:[#allocation4 + $0x48] sm:$0xff]  ;;  %v266_v27 = vld [vmem:[#allocation4 + $0x40] sm:$0xff]  ;;  %v265_v28 = vld [vmem:[#allocation4 + $0x38] sm:$0xff] }
  0x2f   :  { %648 = vmatpush3.msra.mxu1 %v76_v5  ;;  %v264_v29 = vld [vmem:[#allocation4 + $0x30] sm:$0xff]  ;;  %v263_v30 = vld [vmem:[#allocation4 + $0x28] sm:$0xff]  ;;  %v262_v31 = vld [vmem:[#allocation4 + $0x20] sm:$0xff] }
  0x30   :  { %649 = vmatprep.subr.mxu1 %v75_v6  ;;  %v261_v32 = vld [vmem:[#allocation4 + $0x18] sm:$0xff]  ;;  %v260_v33 = vld [vmem:[#allocation4 + $0x10] sm:$0xff]  ;;  %v259_v34 = vld [vmem:[#allocation4 + $0x8] sm:$0xff] }
  0x31   :  { %650 = vmatpush3.msra.mxu1 %v75_v6  ;;  %v258_v35 = vld [vmem:[#allocation4] sm:$0xff] }
  0x32   :  { %651 = vmatprep.subr.mxu1 %v74_v7  ;;  %v81_v36 = vld [vmem:[%s915_s4] ss:$0 sm:$0xff] }
  0x33   :  { %652 = vmatpush3.msra.mxu1 %v74_v7 }
  0x34   :  { %653 = vmatprep.subr.mxu1 %v73_v8 }
  0x35   :  { %654 = vmatpush3.msra.mxu1 %v73_v8 }
  0x36   :  { %655 = vmatprep.subr.mxu1 %v72_v9 }
  0x37   :  { %656 = vmatpush3.msra.mxu1 %v72_v9 }
  0x38   :  { %657 = vmatprep.subr.mxu1 %v71_v10 }
  0x39   :  { %658 = vmatpush3.msra.mxu1 %v71_v10 }
  0x3a   :  { %659 = vmatprep.subr.mxu1 %v70_v11 }
  0x3b   :  { %660 = vmatpush3.msra.mxu1 %v70_v11 }
  0x3c   :  { %661 = vmatprep.subr.mxu1 %v69_v12 }
  0x3d   :  { %662 = vmatpush3.msra.mxu1 %v69_v12 }
  0x3e   :  { %663 = vmatprep.subr.mxu1 %v68_v13 }
  0x3f   :  { %664 = vmatpush3.msra.mxu1 %v68_v13 }
  0x40   :  { %665 = vmatprep.subr.mxu1 %v67_v14 }
  0x41   :  { %666 = vmatpush3.msra.mxu1 %v67_v14 }
  0x42   :  { %667 = vmatprep.subr.mxu1 %v66_v15 }
  0x43   :  { %668 = vmatpush3.msra.mxu1 %v66_v15 }
  0x44   :  { %669 = vmatprep.subr.mxu1 %v65_v16 }
  0x45   :  { %670 = vmatpush3.msra.mxu1 %v65_v16 }
  0x46   :  { %672 = vmatmul.mubr.f32.vlgmr.msra.gmra.mxu1 %v62_v17  ;;  %677 = vmatprep.subr.mxu1 %v273_v20 }
  0x47   :  { %674 = vmatprep.mubr.f32.mxu1 %v63_v18  ;;  %678 = vmatpush3.msra.mxu1 %v273_v20 }
  0x48   :  { %679 = vmatprep.subr.mxu1 %v272_v21 }
  0x49   :  { %680 = vmatpush3.msra.mxu1 %v272_v21 }
  0x4a   :  { %675 = vmatmul.mubr.f32.gmra.mxu1 %v64_v19  ;;  %681 = vmatprep.subr.mxu1 %v271_v22 }
  0x4b   :  { %682 = vmatpush3.msra.mxu1 %v271_v22 }
  0x4c   :  { %683 = vmatprep.subr.mxu1 %v270_v23 }
  0x4d   :  { %684 = vmatpush3.msra.mxu1 %v270_v23 }
  0x4e   :  { %685 = vmatprep.subr.mxu1 %v269_v24 }
  0x4f   :  { %686 = vmatpush3.msra.mxu1 %v269_v24 }
  0x50   :  { %687 = vmatprep.subr.mxu1 %v268_v25 }
  0x51   :  { %688 = vmatpush3.msra.mxu1 %v268_v25 }
  0x52   :  { %689 = vmatprep.subr.mxu1 %v267_v26 }
  0x53   :  { %690 = vmatpush3.msra.mxu1 %v267_v26 }
  0x54   :  { %691 = vmatprep.subr.mxu1 %v266_v27 }
  0x55   :  { %692 = vmatpush3.msra.mxu1 %v266_v27 }
  0x56   :  { %693 = vmatprep.subr.mxu1 %v265_v28 }
  0x57   :  { %694 = vmatpush3.msra.mxu1 %v265_v28 }
  0x58   :  { %695 = vmatprep.subr.mxu1 %v264_v29 }
  0x59   :  { %696 = vmatpush3.msra.mxu1 %v264_v29 }
  0x5a   :  { %697 = vmatprep.subr.mxu1 %v263_v30 }
  0x5b   :  { %698 = vmatpush3.msra.mxu1 %v263_v30 }
  0x5c   :  { %699 = vmatprep.subr.mxu1 %v262_v31 }
  0x5d   :  { %700 = vmatpush3.msra.mxu1 %v262_v31 }
  0x5e   :  { %701 = vmatprep.subr.mxu1 %v261_v32 }
  0x5f   :  { %702 = vmatpush3.msra.mxu1 %v261_v32 }
  0x60   :  { %703 = vmatprep.subr.mxu1 %v260_v33 }
  0x61   :  { %704 = vmatpush3.msra.mxu1 %v260_v33 }
  0x62   :  { %705 = vmatprep.subr.mxu1 %v259_v34 }
  0x63   :  { %706 = vmatpush3.msra.mxu1 %v259_v34 }
  0x64   :  { %707 = vmatprep.subr.mxu1 %v258_v35 }
  0x65   :  { %708 = vmatpush3.msra.mxu1 %v258_v35 }
 0x106   :  { %v673_v37 = vpop.f32.mrf.mxu1 }
 0x107   :  { %v154_v38 = vadd.f32 %v673_v37, %v81_v36 }
 0x108   :  { %v148_v39 = vpop.f32.mrf.mxu1 }
 0x109   :  { %v168_v40 = vmax.f32 %v154_v38, 0.0  ;;  %v149_v41 = vadd.f32 %v148_v39, %v81_v36 }
 0x10a   :  { %v676_v42 = vpop.f32.mrf.mxu1 }
 0x10b   :  { %v179_v43 = vrot.slane %v168_v40, 4  ;;  %v167_v44 = vmax.f32 %v149_v41, 0.0  ;;  %v164_v45 = vadd.f32 %v676_v42, %v81_v36 }
 0x10c   :  { %v158_v46 = vpop.f32.mrf.mxu1 }
 0x10d   :  { %v180_v47 = vadd.f32 %v179_v43, %v168_v40  ;;  %v173_v48 = vrot.slane %v167_v44, 4  ;;  %v170_v49 = vmax.f32 %v164_v45, 0.0  ;;  %v159_v50 = vadd.f32 %v158_v46, %v81_v36 }
 0x10f   :  { %v181_v51 = vrot.slane %v180_v47, 2  ;;  %v174_v52 = vadd.f32 %v173_v48, %v167_v44  ;;  %v191_v53 = vrot.slane %v170_v49, 4  ;;  %v169_v54 = vmax.f32 %v159_v50, 0.0 }
 0x111   :  { %v182_v55 = vadd.f32 %v181_v51, %v180_v47  ;;  %v175_v56 = vrot.slane %v174_v52, 2  ;;  %v192_v57 = vadd.f32 %v191_v53, %v170_v49  ;;  %v185_v58 = vrot.slane %v169_v54, 4 }
 0x113   :  { %v183_v59 = vrot.slane %v182_v55, 1  ;;  %v176_v60 = vadd.f32 %v175_v56, %v174_v52  ;;  %v193_v61 = vrot.slane %v192_v57, 2  ;;  %v186_v62 = vadd.f32 %v185_v58, %v169_v54 }
 0x115   :  { %v184_v63 = vadd.f32 %v183_v59, %v182_v55  ;;  %v177_v0 = vrot.slane %v176_v60, 1  ;;  %v194_v1 = vadd.f32 %v193_v61, %v192_v57  ;;  %v187_v2 = vrot.slane %v186_v62, 2  ;;  %v172_v61 = vld [vmem:[%s915_s4 + $0x2] ss:$0 sm:$0xff] }
 0x117   :  { %v199_v3 = vmul.f32 0.125, %v184_v63  ;;  %v178_v4 = vadd.f32 %v177_v0, %v176_v60  ;;  %v195_v5 = vrot.slane %v194_v1, 1  ;;  %v188_v6 = vadd.f32 %v187_v2, %v186_v62 }
 0x119   :  { %v203_v7 = vsub.f32 %v168_v40, %v199_v3  ;;  %v198_v8 = vmul.f32 0.125, %v178_v4  ;;  %v196_v9 = vadd.f32 %v195_v5, %v194_v1  ;;  %v189_v10 = vrot.slane %v188_v6, 1 }
 0x11b   :  { %v207_v11 = vmul.f32 %v203_v7, %v203_v7  ;;  %v202_v12 = vsub.f32 %v167_v44, %v198_v8  ;;  %v201_v13 = vmul.f32 0.125, %v196_v9  ;;  %v190_v14 = vadd.f32 %v189_v10, %v188_v6  ;;  %v480_v8 = vld [vmem:[#allocation6 + $0xf0] sm:$0xff]  ;;  %v479_v9 = vld [vmem:[#allocation6 + $0xe8] sm:$0xff]  ;;  %v478_v10 = vld [vmem:[#allocation6 + $0xe0] sm:$0xff] }
 0x11d   :  { %v216_v15 = vrot.slane %v207_v11, 4  ;;  %v206_v16 = vmul.f32 %v202_v12, %v202_v12  ;;  %v205_v17 = vsub.f32 %v170_v49, %v201_v13  ;;  %v200_v18 = vmul.f32 0.125, %v190_v14  ;;  %v475_v13 = vld [vmem:[#allocation6 + $0xc8] sm:$0xff]  ;;  %v474_v14 = vld [vmem:[#allocation6 + $0xc0] sm:$0xff] }
 0x11f   :  { %v217_v19 = vadd.f32 %v216_v15, %v207_v11  ;;  %v210_v20 = vrot.slane %v206_v16, 4  ;;  %v209_v21 = vmul.f32 %v205_v17, %v205_v17  ;;  %v204_v22 = vsub.f32 %v169_v54, %v200_v18  ;;  %v171_v54 = vld [vmem:[%s915_s4 + $0x1] ss:$0 sm:$0xff]  ;;  %v477_v11 = vld [vmem:[#allocation6 + $0xd8] sm:$0xff] }
 0x120   :  { %v473_v15 = vld [vmem:[#allocation6 + $0xb8] sm:$0xff]  ;;  %v470_v18 = vld [vmem:[#allocation6 + $0xa0] sm:$0xff] }
 0x121   :  { %v218_v23 = vrot.slane %v217_v19, 2  ;;  %v211_v24 = vadd.f32 %v210_v20, %v206_v16  ;;  %v228_v25 = vrot.slane %v209_v21, 4  ;;  %v208_v26 = vmul.f32 %v204_v22, %v204_v22  ;;  %v472_v16 = vld [vmem:[#allocation6 + $0xb0] sm:$0xff] }
 0x122   :  { %v468_v20 = vld [vmem:[#allocation6 + $0x90] sm:$0xff] }
 0x123   :  { %v219_v27 = vadd.f32 %v218_v23, %v217_v19  ;;  %v212_v28 = vrot.slane %v211_v24, 2  ;;  %v229_v29 = vadd.f32 %v228_v25, %v209_v21  ;;  %v222_v30 = vrot.slane %v208_v26, 4  ;;  %v469_v19 = vld [vmem:[#allocation6 + $0x98] sm:$0xff]  ;;  %v467_v21 = vld [vmem:[#allocation6 + $0x88] sm:$0xff] }
 0x124   :  { %v465_v23 = vld [vmem:[#allocation6 + $0x78] sm:$0xff]  ;;  %v463_v25 = vld [vmem:[#allocation6 + $0x68] sm:$0xff] }
 0x125   :  { %v220_v31 = vrot.slane %v219_v27, 1  ;;  %v213_v32 = vadd.f32 %v212_v28, %v211_v24  ;;  %v230_v33 = vrot.slane %v229_v29, 2  ;;  %v223_v34 = vadd.f32 %v222_v30, %v208_v26  ;;  %v464_v24 = vld [vmem:[#allocation6 + $0x70] sm:$0xff]  ;;  %v462_v26 = vld [vmem:[#allocation6 + $0x60] sm:$0xff] }
 0x126   :  { %v460_v28 = vld [vmem:[#allocation6 + $0x50] sm:$0xff]  ;;  %v458_v30 = vld [vmem:[#allocation6 + $0x40] sm:$0xff] }
 0x127   :  { %v221_v35 = vadd.f32 %v220_v31, %v219_v27  ;;  %v214_v36 = vrot.slane %v213_v32, 1  ;;  %v231_v37 = vadd.f32 %v230_v33, %v229_v29  ;;  %v224_v38 = vrot.slane %v223_v34, 2  ;;  %v461_v27 = vld [vmem:[#allocation6 + $0x58] sm:$0xff]  ;;  %v459_v29 = vld [vmem:[#allocation6 + $0x48] sm:$0xff] }
 0x128   :  { %v457_v31 = vld [vmem:[#allocation6 + $0x38] sm:$0xff]  ;;  %v455_v33 = vld [vmem:[#allocation6 + $0x28] sm:$0xff] }
 0x129   :  { %v235_v39 = vmul.f32 0.125, %v221_v35  ;;  %v215_v40 = vadd.f32 %v214_v36, %v213_v32  ;;  %v232_v41 = vrot.slane %v231_v37, 1  ;;  %v225_v42 = vadd.f32 %v224_v38, %v223_v34  ;;  %v456_v32 = vld [vmem:[#allocation6 + $0x30] sm:$0xff]  ;;  %v454_v34 = vld [vmem:[#allocation6 + $0x20] sm:$0xff]  ;;  %v453_v35 = vld [vmem:[#allocation6 + $0x18] sm:$0xff] }
 0x12a   :  { %v452_v36 = vld [vmem:[#allocation6 + $0x10] sm:$0xff]  ;;  %v450_v38 = vld [vmem:[#allocation6] sm:$0xff] }
 0x12b   :  { %v239_v43 = vadd.f32 1e-05, %v235_v39  ;;  %v234_v44 = vmul.f32 0.125, %v215_v40  ;;  %v233_v45 = vadd.f32 %v232_v41, %v231_v37  ;;  %v226_v46 = vrot.slane %v225_v42, 1  ;;  %v451_v37 = vld [vmem:[#allocation6 + $0x8] sm:$0xff] }
 0x12c   :  { %v810_v39 = vmov 0.0   ;;  %v274_v40 = vld [vmem:[%s915_s4 + $0x3] ss:$0 sm:$0xff] }
 0x12d   :  { %723 = vrsqrt.f32 %v239_v43  ;;  %v238_v47 = vadd.f32 1e-05, %v234_v44  ;;  %v237_v48 = vmul.f32 0.125, %v233_v45  ;;  %v227_v49 = vadd.f32 %v226_v46, %v225_v42  ;;  %559 = vmatprep.mubr.f32.mxu0 %v810_v39 }
 0x12f   :  { %725 = vrsqrt.f32 %v238_v47  ;;  %v241_v50 = vadd.f32 1e-05, %v237_v48  ;;  %v236_v51 = vmul.f32 0.125, %v227_v49 }
 0x131   :  { %727 = vrsqrt.f32 %v241_v50  ;;  %v240_v52 = vadd.f32 1e-05, %v236_v51 }
 0x133   :  { %729 = vrsqrt.f32 %v240_v52 }
 0x13a   :  { %v724_v53 = vpop.eup %723 }
 0x13b   :  { %v247_v55 = vmul.f32 %v724_v53, %v203_v7  ;;  %v481_v7 = vld [vmem:[#allocation6 + $0xf8] sm:$0xff] }
 0x13c   :  { %v726_v56 = vpop.eup %725  ;;  %495 = vmatprep.subr.mxu0 %v481_v7 }
 0x13d   :  { %v246_v57 = vmul.f32 %v726_v56, %v202_v12  ;;  %v251_v59 = vmul.f32 %v247_v55, %v171_v54  ;;  %496 = vmatpush1.msra.mxu0 %v480_v8  ;;  %v476_v12 = vld [vmem:[#allocation6 + $0xd0] sm:$0xff] }
 0x13e   :  { %v728_v58 = vpop.eup %727  ;;  %497 = vmatprep.subr.mxu0 %v479_v9 }
 0x13f   :  { %v249_v60 = vmul.f32 %v728_v58, %v205_v17  ;;  %v250_v62 = vmul.f32 %v246_v57, %v171_v54  ;;  %v255_v2 = vadd.f32 %v251_v59, %v172_v61  ;;  %498 = vmatpush1.msra.mxu0 %v478_v10  ;;  %v471_v17 = vld [vmem:[#allocation6 + $0xa8] sm:$0xff] }
 0x140   :  { %v730_v63 = vpop.eup %729  ;;  %499 = vmatprep.subr.mxu0 %v477_v11 }
 0x141   :  { %v248_v0 = vmul.f32 %v730_v63, %v204_v22  ;;  %v254_v1 = vadd.f32 %v250_v62, %v172_v61  ;;  %v253_v3 = vmul.f32 %v249_v60, %v171_v54  ;;  %500 = vmatpush1.msra.mxu0 %v476_v12  ;;  %v466_v22 = vld [vmem:[#allocation6 + $0x80] sm:$0xff] }
 0x142   :  { %501 = vmatprep.subr.mxu0 %v475_v13 }
 0x143   :  { %709 = vmatprep.mubr.f32.mxu1 %v254_v1  ;;  %v252_v4 = vmul.f32 %v248_v0, %v171_v54  ;;  %v257_v6 = vadd.f32 %v253_v3, %v172_v61  ;;  %502 = vmatpush1.msra.mxu0 %v474_v14 }
 0x144   :  { %710 = vmatmul.mubr.f32.vlgmr.msra.gmra.mxu1 %v255_v2  ;;  %503 = vmatprep.subr.mxu0 %v473_v15 }
 0x145   :  { %v256_v5 = vadd.f32 %v252_v4, %v172_v61  ;;  %504 = vmatpush1.msra.mxu0 %v472_v16 }
 0x146   :  { %505 = vmatprep.subr.mxu0 %v471_v17 }
 0x147   :  { %712 = vmatprep.mubr.f32.mxu1 %v256_v5  ;;  %506 = vmatpush1.msra.mxu0 %v470_v18 }
 0x148   :  { %713 = vmatmul.mubr.f32.gmra.mxu1 %v257_v6  ;;  %507 = vmatprep.subr.mxu0 %v469_v19 }
 0x149   :  { %508 = vmatpush1.msra.mxu0 %v468_v20 }
 0x14a   :  { %509 = vmatprep.subr.mxu0 %v467_v21 }
 0x14b   :  { %510 = vmatpush1.msra.mxu0 %v466_v22 }
 0x14c   :  { %511 = vmatprep.subr.mxu0 %v465_v23 }
 0x14d   :  { %512 = vmatpush1.msra.mxu0 %v464_v24 }
 0x14e   :  { %513 = vmatprep.subr.mxu0 %v463_v25 }
 0x14f   :  { %514 = vmatpush1.msra.mxu0 %v462_v26 }
 0x150   :  { %515 = vmatprep.subr.mxu0 %v461_v27 }
 0x151   :  { %516 = vmatpush1.msra.mxu0 %v460_v28 }
 0x152   :  { %517 = vmatprep.subr.mxu0 %v459_v29 }
 0x153   :  { %518 = vmatpush1.msra.mxu0 %v458_v30 }
 0x154   :  { %519 = vmatprep.subr.mxu0 %v457_v31 }
 0x155   :  { %520 = vmatpush1.msra.mxu0 %v456_v32 }
 0x156   :  { %521 = vmatprep.subr.mxu0 %v455_v33 }
 0x157   :  { %522 = vmatpush1.msra.mxu0 %v454_v34 }
 0x158   :  { %523 = vmatprep.subr.mxu0 %v453_v35 }
 0x159   :  { %524 = vmatpush1.msra.mxu0 %v452_v36 }
 0x15a   :  { %525 = vmatprep.subr.mxu0 %v451_v37 }
 0x15b   :  { %526 = vmatpush1.msra.mxu0 %v450_v38 }
 0x204   :  { %v711_v41 = vpop.f32.mrf.mxu1 }
 0x205   :  { %v347_v42 = vadd.f32 %v711_v41, %v274_v40 }
 0x206   :  { %v341_v43 = vpop.f32.mrf.mxu1 }
 0x207   :  { %v361_v44 = vmax.f32 %v347_v42, 0.0  ;;  %v342_v45 = vadd.f32 %v341_v43, %v274_v40 }
 0x208   :  { %v714_v46 = vpop.f32.mrf.mxu1 }
 0x209   :  { %v372_v47 = vrot.slane %v361_v44, 4  ;;  %v360_v48 = vmax.f32 %v342_v45, 0.0  ;;  %v357_v49 = vadd.f32 %v714_v46, %v274_v40 }
 0x20a   :  { %v351_v50 = vpop.f32.mrf.mxu1 }
 0x20b   :  { %v373_v51 = vadd.f32 %v372_v47, %v361_v44  ;;  %v366_v52 = vrot.slane %v360_v48, 4  ;;  %v363_v53 = vmax.f32 %v357_v49, 0.0  ;;  %v352_v54 = vadd.f32 %v351_v50, %v274_v40 }
 0x20d   :  { %v374_v55 = vrot.slane %v373_v51, 2  ;;  %v367_v56 = vadd.f32 %v366_v52, %v360_v48  ;;  %v384_v57 = vrot.slane %v363_v53, 4  ;;  %v362_v58 = vmax.f32 %v352_v54, 0.0 }
 0x20f   :  { %v375_v59 = vadd.f32 %v374_v55, %v373_v51  ;;  %v368_v60 = vrot.slane %v367_v56, 2  ;;  %v385_v61 = vadd.f32 %v384_v57, %v363_v53  ;;  %v378_v62 = vrot.slane %v362_v58, 4 }
 0x211   :  { %v376_v63 = vrot.slane %v375_v59, 1  ;;  %v369_v0 = vadd.f32 %v368_v60, %v367_v56  ;;  %v386_v1 = vrot.slane %v385_v61, 2  ;;  %v379_v2 = vadd.f32 %v378_v62, %v362_v58  ;;  %v364_v62 = vld [vmem:[%s915_s4 + $0x4] ss:$0 sm:$0xff] }
 0x213   :  { %v377_v3 = vadd.f32 %v376_v63, %v375_v59  ;;  %v370_v4 = vrot.slane %v369_v0, 1  ;;  %v387_v5 = vadd.f32 %v386_v1, %v385_v61  ;;  %v380_v6 = vrot.slane %v379_v2, 2  ;;  %v365_v1 = vld [vmem:[%s915_s4 + $0x5] ss:$0 sm:$0xff] }
 0x215   :  { %v391_v7 = vmul.f32 0.125, %v377_v3  ;;  %v371_v8 = vadd.f32 %v370_v4, %v369_v0  ;;  %v388_v9 = vrot.slane %v387_v5, 1  ;;  %v381_v10 = vadd.f32 %v380_v6, %v379_v2 }
 0x217   :  { %v395_v11 = vsub.f32 %v361_v44, %v391_v7  ;;  %v390_v12 = vmul.f32 0.125, %v371_v8  ;;  %v389_v13 = vadd.f32 %v388_v9, %v387_v5  ;;  %v382_v14 = vrot.slane %v381_v10, 1 }
 0x219   :  { %v399_v15 = vmul.f32 %v395_v11, %v395_v11  ;;  %v394_v16 = vsub.f32 %v360_v48, %v390_v12  ;;  %v393_v17 = vmul.f32 0.125, %v389_v13  ;;  %v383_v18 = vadd.f32 %v382_v14, %v381_v10 }
 0x21a   :  { %v485_v12 = vlaneseq }
 0x21b   :  { %v408_v19 = vrot.slane %v399_v15, 4  ;;  %v398_v20 = vmul.f32 %v394_v16, %v394_v16  ;;  %v397_v21 = vsub.f32 %v363_v53, %v393_v17  ;;  %v392_v22 = vmul.f32 0.125, %v383_v18 }
 0x21c   :  { %v486_v13 = vshrl.u32 %v485_v12, 7 }
 0x21d   :  { %v409_v23 = vadd.f32 %v408_v19, %v399_v15  ;;  %v402_v24 = vrot.slane %v398_v20, 4  ;;  %v401_v25 = vmul.f32 %v397_v21, %v397_v21  ;;  %v396_v26 = vsub.f32 %v362_v58, %v392_v22  ;;  %v598_v15 = vld [vmem:[%s915_s4 + $0x6] ss:$8 sm:$0x3] }
 0x21e   :  { %v487_v14 = vsub.s32 0, %v486_v13 }
 0x21f   :  { %v410_v27 = vrot.slane %v409_v23, 2  ;;  %v403_v28 = vadd.f32 %v402_v24, %v398_v20  ;;  %v420_v29 = vrot.slane %v401_v25, 4  ;;  %v400_v30 = vmul.f32 %v396_v26, %v396_v26 }
 0x220   :  { %v488_v17 = vrot.slane %v598_v15, %v487_v14 }
 0x221   :  { %v411_v31 = vadd.f32 %v410_v27, %v409_v23  ;;  %v404_v32 = vrot.slane %v403_v28, 2  ;;  %v421_v33 = vadd.f32 %v420_v29, %v401_v25  ;;  %v414_v34 = vrot.slane %v400_v30, 4 }
 0x223   :  { %v412_v35 = vrot.slane %v411_v31, 1  ;;  %v405_v36 = vadd.f32 %v404_v32, %v403_v28  ;;  %v422_v37 = vrot.slane %v421_v33, 2  ;;  %v415_v38 = vadd.f32 %v414_v34, %v400_v30 }
 0x225   :  { %v413_v40 = vadd.f32 %v412_v35, %v411_v31  ;;  %v406_v41 = vrot.slane %v405_v36, 1  ;;  %v423_v42 = vadd.f32 %v422_v37, %v421_v33  ;;  %v416_v43 = vrot.slane %v415_v38, 2 }
 0x227   :  { %v427_v44 = vmul.f32 0.125, %v413_v40  ;;  %v407_v45 = vadd.f32 %v406_v41, %v405_v36  ;;  %v424_v46 = vrot.slane %v423_v42, 1  ;;  %v417_v47 = vadd.f32 %v416_v43, %v415_v38 }
 0x229   :  { %v431_v48 = vadd.f32 1e-05, %v427_v44  ;;  %v426_v49 = vmul.f32 0.125, %v407_v45  ;;  %v425_v50 = vadd.f32 %v424_v46, %v423_v42  ;;  %v418_v51 = vrot.slane %v417_v47, 1 }
 0x22b   :  { %731 = vrsqrt.f32 %v431_v48  ;;  %v430_v52 = vadd.f32 1e-05, %v426_v49  ;;  %v429_v53 = vmul.f32 0.125, %v425_v50  ;;  %v419_v54 = vadd.f32 %v418_v51, %v417_v47 }
 0x22d   :  { %733 = vrsqrt.f32 %v430_v52  ;;  %v428_v55 = vmul.f32 0.125, %v419_v54  ;;  %v433_v56 = vadd.f32 1e-05, %v429_v53 }
 0x22f   :  { %v432_v57 = vadd.f32 1e-05, %v428_v55 }
 0x231   :  { %735 = vrsqrt.f32 %v432_v57 }
 0x232   :  { %737 = vrsqrt.f32 %v433_v56 }
 0x238   :  { %v732_v58 = vpop.eup %731 }
 0x239   :  { %v439_v60 = vmul.f32 %v732_v58, %v395_v11 }
 0x23a   :  { %v734_v59 = vpop.eup %733 }
 0x23b   :  { %v438_v61 = vmul.f32 %v734_v59, %v394_v16  ;;  %v443_v4 = vmul.f32 %v439_v60, %v364_v62  ;;  %v491_v16 = vsub.s32 1, %v486_v13 }
 0x23d   :  { %v442_v63 = vmul.f32 %v438_v61, %v364_v62  ;;  %v447_v7 = vadd.f32 %v443_v4, %v365_v1  ;;  %v492_v18 = vrot.slane %v598_v15, %v491_v16 }
 0x23e   :  { %v736_v0 = vpop.eup %735 }
 0x23f   :  { %v440_v2 = vmul.f32 %v736_v0, %v396_v26  ;;  %v446_v3 = vadd.f32 %v442_v63, %v365_v1  ;;  %v738_v5 = vpop.eup %737 }
 0x240   :  { %v441_v6 = vmul.f32 %v738_v5, %v397_v21 }
 0x241   :  { %560 = vmatmul.mubr.f32.vlgmr.msra.gmra.mxu0 %v446_v3  ;;  %v444_v8 = vmul.f32 %v440_v2, %v364_v62 }
 0x242   :  { %565 = vmatprep.mubr.f32.mxu0 %v810_v39  ;;  %v445_v10 = vmul.f32 %v441_v6, %v364_v62 }
 0x243   :  { %v448_v9 = vadd.f32 %v444_v8, %v365_v1 }
 0x244   :  { %v449_v11 = vadd.f32 %v445_v10, %v365_v1 }
 0x245   :  { %566 = vmatmul.mubr.f32.gmra.mxu0 %v447_v7 }
 0x246   :  { %571 = vmatprep.mubr.f32.mxu0 %v810_v39 }
 0x249   :  { %572 = vmatmul.mubr.f32.gmra.mxu0 %v448_v9 }
 0x24a   :  { %577 = vmatprep.mubr.f32.mxu0 %v810_v39 }
 0x24d   :  { %578 = vmatmul.mubr.f32.gmra.mxu0 %v449_v11 }
 0x301   :  { %v561_v19 = vpop.f32.mrf.mxu0 }
 0x302   :  { %v562_v20 = vadd.f32 %v561_v19, %v488_v17 }
 0x303   :  { %v563_v21 = vpop.f32.mrf.mxu0 }
 0x304   :  { %584 = vst [vmem:[%s916_s5] sm:$0xff] %v562_v20  ;;  %v564_v39 = vadd.f32 %v563_v21, %v492_v18 }
 0x305   :  { %v567_v22 = vpop.f32.mrf.mxu0 }
 0x306   :  { %585 = vst [vmem:[%s916_s5 + $0x8] sm:$0xff] %v564_v39  ;;  %v568_v23 = vadd.f32 %v567_v22, %v488_v17 }
 0x307   :  { %v569_v24 = vpop.f32.mrf.mxu0 }
 0x308   :  { %586 = vst [vmem:[%s916_s5 + $0x10] sm:$0xff] %v568_v23  ;;  %v570_v25 = vadd.f32 %v569_v24, %v492_v18 }
 0x309   :  { %v573_v26 = vpop.f32.mrf.mxu0 }
 0x30a   :  { %587 = vst [vmem:[%s916_s5 + $0x18] sm:$0xff] %v570_v25  ;;  %v574_v27 = vadd.f32 %v573_v26, %v488_v17 }
 0x30b   :  { %v575_v28 = vpop.f32.mrf.mxu0 }
 0x30c   :  { %588 = vst [vmem:[%s916_s5 + $0x20] sm:$0xff] %v574_v27  ;;  %v576_v29 = vadd.f32 %v575_v28, %v492_v18 }
 0x30d   :  { %v579_v30 = vpop.f32.mrf.mxu0 }
 0x30e   :  { %589 = vst [vmem:[%s916_s5 + $0x28] sm:$0xff] %v576_v29  ;;  %v580_v31 = vadd.f32 %v579_v30, %v488_v17 }
 0x30f   :  { %v581_v32 = vpop.f32.mrf.mxu0 }
 0x310   :  { %590 = vst [vmem:[%s916_s5 + $0x30] sm:$0xff] %v580_v31  ;;  %v582_v33 = vadd.f32 %v581_v32, %v492_v18 }
 0x312   :  { %591 = vst [vmem:[%s916_s5 + $0x38] sm:$0xff] %v582_v33 }
 0x313   :  { %596 = vsyncpa [#allocation3], 1 }
 0x314   :  { %597 = vsyncpa [#allocation5], 1 }

</bundles_post_ra>
